<compile_context>
chip_gen: v6e
topology: v6e:2x2x1
jax: 0.10.0
libtpu: 0.0.40
codegen_flags: <defaults>
</compile_context>

<pallas_src>
import functools
import math

import jax
import jax.numpy as jnp
from jax import lax
from jax.experimental import pallas as pl
from jax.experimental.pallas import tpu as pltpu


# ---------------------------------------------------------------------------
# Kernel 1: c_attn (Conv1D):  qkv = x @ W_attn + b_attn
# ---------------------------------------------------------------------------
def _c_attn_kernel(x_ref, w_ref, b_ref, qkv_ref):
    # x_ref: (1, t_rows, E) bf16 ; w_ref: (E, 3E) bf16 ; b_ref: (1, 3E) f32
    acc = jnp.dot(x_ref[0], w_ref[...], preferred_element_type=jnp.float32)
    acc = acc + b_ref[...]                       # broadcast (1,3E) -> (t_rows,3E)
    qkv_ref[0] = acc.astype(qkv_ref.dtype)


# ---------------------------------------------------------------------------
# Kernel 2: flash attention (causal, online softmax)
#   grid = (B, H, num_q_blocks, num_kv_blocks), kv axis innermost / "arbitrary"
# ---------------------------------------------------------------------------
def _flash_attn_kernel(q_ref, k_ref, v_ref, o_ref, m_sc, l_sc, acc_sc, *,
                       tq, tk, scale):
    qi = pl.program_id(2)
    ki = pl.program_id(3)
    nk = pl.num_programs(3)

    q_start = qi * tq
    k_start = ki * tk

    @pl.when(ki == 0)
    def _init():
        m_sc[...] = jnp.full_like(m_sc, -jnp.inf)
        l_sc[...] = jnp.zeros_like(l_sc)
        acc_sc[...] = jnp.zeros_like(acc_sc)

    # Skip kv blocks that lie entirely above the causal diagonal (fully masked).
    @pl.when(k_start < q_start + tq)
    def _compute():
        q = q_ref[0, 0]                                          # (tq, D) bf16
        if scale != 1.0:
            q = q * jnp.asarray(scale, dtype=q.dtype)            # fold 1/sqrt(D) into q
        k = k_ref[0, 0]                                          # (tk, D) bf16
        v = v_ref[0, 0]                                          # (tk, D) bf16

        # scores (tq, tk), f32 accumulation on the MXU
        s = lax.dot_general(q, k, (((1,), (1,)), ((), ())),
                            preferred_element_type=jnp.float32)

        # causal mask (only diagonal-straddling blocks actually change values)
        row = q_start + lax.broadcasted_iota(jnp.int32, (tq, tk), 0)
        col = k_start + lax.broadcasted_iota(jnp.int32, (tq, tk), 1)
        s = jnp.where(col <= row, s, jnp.finfo(jnp.float32).min)

        # online softmax update (f32)
        m_prev = m_sc[...]
        m_new = jnp.maximum(m_prev, jnp.max(s, axis=-1, keepdims=True))
        alpha = jnp.exp(m_prev - m_new)
        p = jnp.exp(s - m_new)
        l_sc[...] = alpha * l_sc[...] + jnp.sum(p, axis=-1, keepdims=True)
        acc_sc[...] = alpha * acc_sc[...] + jnp.dot(
            p.astype(v.dtype), v, preferred_element_type=jnp.float32)
        m_sc[...] = m_new

    @pl.when(ki == nk - 1)
    def _finalize():
        inv_l = pl.reciprocal(l_sc[...], approx=True)
        o_ref[0, 0] = (acc_sc[...] * inv_l).astype(o_ref.dtype)


# ---------------------------------------------------------------------------
# Kernel 3: c_proj (Conv1D):  out = attn @ W_proj + b_proj
# ---------------------------------------------------------------------------
def _c_proj_kernel(a_ref, w_ref, b_ref, o_ref):
    acc = jnp.dot(a_ref[0], w_ref[...], preferred_element_type=jnp.float32)
    acc = acc + b_ref[...]
    o_ref[0] = acc.astype(o_ref.dtype)


def _pick_tile(n, preferred):
    for t in preferred:
        if t <= n and n % t == 0:
            return t
    return n


def gpt2_attention(x, w_attn, b_attn, w_proj, b_proj, *, num_heads,
                   scale_attn_weights=True):
    """x: [B, S, E]. Weights follow HF Conv1D convention (y = x @ W + b)."""
    B, S, E = x.shape
    H = num_heads
    D = E // H
    assert D * H == E
    out_dtype = x.dtype

    # bf16 operands for every MXU matmul (f32 accumulation inside the kernels).
    xb = x.astype(jnp.bfloat16)
    w_attn_b = w_attn.astype(jnp.bfloat16)
    w_proj_b = w_proj.astype(jnp.bfloat16)
    b_attn_f = b_attn.astype(jnp.float32).reshape(1, 3 * E)
    b_proj_f = b_proj.astype(jnp.float32).reshape(1, E)

    vmem_limit = 32 * 1024 * 1024  # safe on v5e / v6e / v7x

    # ---------------- c_attn projection ----------------
    t_rows = _pick_tile(S, (512, 256, 128, 64, 32, 16, 8))
    grid_p = (B, S // t_rows)

    qkv = pl.pallas_call(
        _c_attn_kernel,
        out_shape=jax.ShapeDtypeStruct((B, S, 3 * E), jnp.bfloat16),
        grid_spec=pltpu.PrefetchScalarGridSpec(
            num_scalar_prefetch=0,
            grid=grid_p,
            in_specs=[
                pl.BlockSpec((1, t_rows, E), lambda b, i: (b, i, 0)),
                pl.BlockSpec((E, 3 * E), lambda b, i: (0, 0)),
                pl.BlockSpec((1, 3 * E), lambda b, i: (0, 0)),
            ],
            out_specs=pl.BlockSpec((1, t_rows, 3 * E), lambda b, i: (b, i, 0)),
        ),
        compiler_params=pltpu.CompilerParams(
            dimension_semantics=("parallel", "parallel"),
            vmem_limit_bytes=vmem_limit),
        cost_estimate=pl.CostEstimate(
            flops=2 * B * S * E * 3 * E,
            transcendentals=0,
            bytes_accessed=B * S * E * 2 + E * 3 * E * 2 + B * S * 3 * E * 2),
    )(xb, w_attn_b, b_attn_f)

    # Head split (cheap XLA reshape/transpose; keeps per-head tiles lane-aligned
    # so the attention kernel never slices at sub-128-lane offsets).
    qkv = qkv.reshape(B, S, 3, H, D)
    q = jnp.transpose(qkv[:, :, 0], (0, 2, 1, 3))   # (B, H, S, D)
    k = jnp.transpose(qkv[:, :, 1], (0, 2, 1, 3))
    v = jnp.transpose(qkv[:, :, 2], (0, 2, 1, 3))

    # ---------------- flash attention ----------------
    tq = _pick_tile(S, (128, 64, 32, 16, 8))
    tk = _pick_tile(S, (128, 64, 32, 16, 8))
    nq, nk = S // tq, S // tk
    scale = (1.0 / math.sqrt(D)) if scale_attn_weights else 1.0

    flash = functools.partial(_flash_attn_kernel, tq=tq, tk=tk, scale=scale)

    attn = pl.pallas_call(
        flash,
        out_shape=jax.ShapeDtypeStruct((B, H, S, D), jnp.bfloat16),
        grid_spec=pltpu.PrefetchScalarGridSpec(
            num_scalar_prefetch=0,
            grid=(B, H, nq, nk),
            in_specs=[
                pl.BlockSpec((1, 1, tq, D), lambda b, h, i, j: (b, h, i, 0)),
                pl.BlockSpec((1, 1, tk, D), lambda b, h, i, j: (b, h, j, 0)),
                pl.BlockSpec((1, 1, tk, D), lambda b, h, i, j: (b, h, j, 0)),
            ],
            out_specs=pl.BlockSpec((1, 1, tq, D), lambda b, h, i, j: (b, h, i, 0)),
            scratch_shapes=[
                pltpu.VMEM((tq, 1), jnp.float32),   # running max m
                pltpu.VMEM((tq, 1), jnp.float32),   # running sum l
                pltpu.VMEM((tq, D), jnp.float32),   # output accumulator
            ],
        ),
        compiler_params=pltpu.CompilerParams(
            dimension_semantics=("parallel", "parallel", "parallel", "arbitrary"),
            vmem_limit_bytes=vmem_limit),
        cost_estimate=pl.CostEstimate(
            flops=4 * B * H * S * S * D,
            transcendentals=B * H * S * S,
            bytes_accessed=4 * B * H * S * D * 2),
    )(q, k, v)

    # _merge_heads: (B,H,S,D) -> (B,S,E)
    attn = jnp.transpose(attn, (0, 2, 1, 3)).reshape(B, S, E)

    # ---------------- c_proj projection ----------------
    out = pl.pallas_call(
        _c_proj_kernel,
        out_shape=jax.ShapeDtypeStruct((B, S, E), out_dtype),
        grid_spec=pltpu.PrefetchScalarGridSpec(
            num_scalar_prefetch=0,
            grid=grid_p,
            in_specs=[
                pl.BlockSpec((1, t_rows, E), lambda b, i: (b, i, 0)),
                pl.BlockSpec((E, E), lambda b, i: (0, 0)),
                pl.BlockSpec((1, E), lambda b, i: (0, 0)),
            ],
            out_specs=pl.BlockSpec((1, t_rows, E), lambda b, i: (b, i, 0)),
        ),
        compiler_params=pltpu.CompilerParams(
            dimension_semantics=("parallel", "parallel"),
            vmem_limit_bytes=vmem_limit),
        cost_estimate=pl.CostEstimate(
            flops=2 * B * S * E * E,
            transcendentals=0,
            bytes_accessed=B * S * E * 2 + E * E * 2 + B * S * E * 4),
    )(attn, w_proj_b, b_proj_f)

    return out


def gpt2_attention_reference(x, w_attn, b_attn, w_proj, b_proj, *, num_heads,
                             scale_attn_weights=True):
    """Pure-JAX f32 reference mirroring the PyTorch module (eval mode)."""
    B, S, E = x.shape
    D = E // num_heads
    qkv = jnp.einsum("bse,ef->bsf", x, w_attn) + b_attn
    q, k, v = jnp.split(qkv, 3, axis=-1)

    def split_heads(t):
        return t.reshape(B, S, num_heads, D).transpose(0, 2, 1, 3)   # (B,H,S,D)

    q, k, v = split_heads(q), split_heads(k), split_heads(v)
    scores = jnp.einsum("bhqd,bhkd->bhqk", q, k)
    if scale_attn_weights:
        scores = scores / jnp.sqrt(jnp.float32(D))
    causal = jnp.tril(jnp.ones((S, S), dtype=bool))
    scores = jnp.where(causal[None, None], scores, jnp.finfo(scores.dtype).min)
    probs = jax.nn.softmax(scores, axis=-1)
    out = jnp.einsum("bhqk,bhkd->bhqd", probs, v)
    out = out.transpose(0, 2, 1, 3).reshape(B, S, E)
    return jnp.einsum("bse,ef->bsf", out, w_proj) + b_proj


if __name__ == "__main__":
    # Small GPT-2-like config: hidden=32, heads=4, head_dim=8, seq=8, batch=2.
    B, S, E, H = 2, 8, 32, 4

    key = jax.random.PRNGKey(0)
    k_x, k_wa, k_ba, k_wp, k_bp = jax.random.split(key, 5)

    x = jax.random.normal(k_x, (B, S, E), dtype=jnp.float32)
    w_attn = (0.02 * jax.random.normal(k_wa, (E, 3 * E))).astype(jnp.float32)
    b_attn = (0.02 * jax.random.normal(k_ba, (3 * E,))).astype(jnp.float32)
    w_proj = (0.02 * jax.random.normal(k_wp, (E, E))).astype(jnp.float32)
    b_proj = (0.02 * jax.random.normal(k_bp, (E,))).astype(jnp.float32)

    out = gpt2_attention(x, w_attn, b_attn, w_proj, b_proj,
                         num_heads=H, scale_attn_weights=True)
    out = jax.block_until_ready(out)

    ref = gpt2_attention_reference(x, w_attn, b_attn, w_proj, b_proj,
                                   num_heads=H, scale_attn_weights=True)
    assert out.shape == (B, S, E)
    assert out.dtype == x.dtype
    max_err = float(jnp.max(jnp.abs(out - ref)))
    assert jnp.allclose(out, ref, atol=1e-2, rtol=1e-2), (
        f"mismatch vs reference (max abs err {max_err})")

    print("KERNEL_OK")
</pallas_src>

<mosaic_0001>
module attributes {stable_mosaic.version = 11 : i64} {
  func.func @_c_attn_kernel(%arg0: i32, %arg1: i32, %arg2: memref<1x8x32xbf16, #tpu.memory_space<vmem>>, %arg3: memref<32x96xbf16, #tpu.memory_space<vmem>>, %arg4: memref<1x96xf32, #tpu.memory_space<vmem>>, %arg5: memref<1x8x96xbf16, #tpu.memory_space<vmem>>) attributes {dimension_semantics = [#tpu.dimension_semantics<parallel>, #tpu.dimension_semantics<parallel>], iteration_bounds = array<i64: 2, 1>, scalar_prefetch = 0 : i64, scratch_operands = 0 : i64, tpu.core_type = #tpu.core_type<tc>, window_params = [{transform_indices = @transform_0, window_bounds = array<i64: 1, 8, 32>}, {pipeline_mode = #tpu.pipeline_mode<synchronous>, transform_indices = @transform_1, window_bounds = array<i64: 32, 96>}, {pipeline_mode = #tpu.pipeline_mode<synchronous>, transform_indices = @transform_2, window_bounds = array<i64: 1, 96>}, {transform_indices = @transform_3, window_bounds = array<i64: 1, 8, 96>}]} {
    %c0 = arith.constant 0 : index
    %c0_0 = arith.constant 0 : index
    %c0_1 = arith.constant 0 : index
    %0 = vector.load %arg2[%c0, %c0_0, %c0_1] : memref<1x8x32xbf16, #tpu.memory_space<vmem>>, vector<1x8x32xbf16>
    %1 = vector.shape_cast %0 : vector<1x8x32xbf16> to vector<8x32xbf16>
    %c0_2 = arith.constant 0 : index
    %c0_3 = arith.constant 0 : index
    %2 = vector.load %arg3[%c0_2, %c0_3] : memref<32x96xbf16, #tpu.memory_space<vmem>>, vector<32x96xbf16>
    %cst = arith.constant dense<0.000000e+00> : vector<8x96xf32>
    %3 = tpu.matmul %1, %2, %cst {dimension_numbers = #tpu.dot_dimension_numbers<[1], [0], [0], [1], [0, 0, 1, 1], [], []>} : vector<8x32xbf16>, vector<32x96xbf16>, vector<8x96xf32> -> vector<8x96xf32>
    %c0_4 = arith.constant 0 : index
    %c0_5 = arith.constant 0 : index
    %4 = vector.load %arg4[%c0_4, %c0_5] : memref<1x96xf32, #tpu.memory_space<vmem>>, vector<1x96xf32>
    %5 = vector.broadcast %4 : vector<1x96xf32> to vector<8x96xf32>
    %6 = arith.addf %3, %5 : vector<8x96xf32>
    %7 = arith.truncf %6 : vector<8x96xf32> to vector<8x96xbf16>
    %c0_6 = arith.constant 0 : index
    %c0_7 = arith.constant 0 : index
    %c0_8 = arith.constant 0 : index
    %8 = vector.load %arg5[%c0_6, %c0_7, %c0_8] : memref<1x8x96xbf16, #tpu.memory_space<vmem>>, vector<1x8x96xbf16>
    %9 = vector.shape_cast %8 : vector<1x8x96xbf16> to vector<8x96xbf16>
    %10 = vector.shape_cast %7 : vector<8x96xbf16> to vector<1x8x96xbf16>
    tpu.vector_store %arg5[%c0_6, %c0_7, %c0_8], %10 {strides = array<i32>} : memref<1x8x96xbf16, #tpu.memory_space<vmem>>, vector<1x8x96xbf16>,
    return
  }
  func.func @transform_0(%arg0: i32, %arg1: i32) -> (i32, i32, i32) {
    %c0_i32 = arith.constant 0 : i32
    %c0_i32_0 = arith.constant 0 : i32
    return %arg0, %arg1, %c0_i32 : i32, i32, i32
  }
  func.func @transform_1(%arg0: i32, %arg1: i32) -> (i32, i32) {
    %c0_i32 = arith.constant 0 : i32
    %c0_i32_0 = arith.constant 0 : i32
    %c0_i32_1 = arith.constant 0 : i32
    return %c0_i32, %c0_i32_0 : i32, i32
  }
  func.func @transform_2(%arg0: i32, %arg1: i32) -> (i32, i32) {
    %c0_i32 = arith.constant 0 : i32
    %c0_i32_0 = arith.constant 0 : i32
    %c0_i32_1 = arith.constant 0 : i32
    return %c0_i32, %c0_i32_0 : i32, i32
  }
  func.func @transform_3(%arg0: i32, %arg1: i32) -> (i32, i32, i32) {
    %c0_i32 = arith.constant 0 : i32
    %c0_i32_0 = arith.constant 0 : i32
    return %arg0, %arg1, %c0_i32 : i32, i32, i32
  }
}

</mosaic_0001>

<bundles_post_ra>
// kernel: tpu_custom_call.1
= control target key start
LH: loop header
LB: loop body
LE: loop exit
PB: predicated region body
PF: predicated region fallthrough
CT: control target
= control target key end

     0   :  { %8 = vsyncpa [#allocation3], 0  ;;  %s853_s0 = inlined_call_operand.hbm [shape: bf16[2,8,32], index: 0, kind: input, shape index: {}]   ;;  %s854_s1 = inlined_call_operand.hbm [shape: bf16[32,96], index: 1, kind: input, shape index: {}]   ;;  %s855_s2 = inlined_call_operand.vmem [shape: f32[1,96], index: 2, kind: input, shape index: {}]   ;;  %s856_s3 = inlined_call_operand.hbm [shape: bf16[2,8,96], index: 3, kind: output, shape index: {}]  }
   0x1   :  { %10 = vsyncpa [#allocation3 + $0x1], 0 }
   0x2   :  { %11 = vsyncpa [#allocation6], 0 }
   0x3   :  { %12 = vsyncpa [#allocation4], 0 }
   0x4   :  { %14 = vsyncpa [#allocation4 + $0x1], 0  ;;  %s671_s12 = smov 0   ;;  %s673_s13 = smov 0  }
   0x5   :  { %s675_s14 = smov 0   ;;  %s677_s15 = smov 0  }
   0x6   :  { %s679_s16 = smov 0   ;;  %s681_s17 = smov 0  }
   0x7 LB: > { %s395_s18 = sadd.s32 4294967295, %s642_s17   ;;  %s396_s19 = sadd.s32 4294967294, %s642_s17   ;;  %s642_s17 = sphi %s681_s17, %s20_s17   ;;  %s638_s16 = sphi %s679_s16, %s874_s16   ;;  %s634_s15 = sphi %s677_s15, %s873_s15   ;;  %s630_s14 = sphi %s675_s14, %s872_s14   ;;  %s626_s13 = sphi %s673_s13, %s871_s13   ;;  %s622_s12 = sphi %s671_s12, %s870_s12  }
   0x8   : > { %p54_p0 = scmp.ne.s32.totalorder %s626_s13, %s622_s12  ;;  %p705_p1 = scmp.eq.s32.totalorder %s395_s18, 0 }
   0x9   : > { %p709_p2 = scmp.eq.s32.totalorder %s395_s18, 1  ;;  %p128_p3 = scmp.eq.s32.totalorder %s396_s19, 1 }
   0xa   : > { %p715_p4 = por %p705_p1, %p54_p0  ;;  %p397_p5 = scmp.ge.s32.totalorder %s642_s17, 1 }
   0xb   : > { %p720_p6 = por %p128_p3, %p54_p0  ;;  %p135_p7 = scmp.lt.s32.totalorder %s642_s17, 3 }
   0xc   : > { %s860_s22 = scalar_select %p715_p4, 1, 0 }
   0xd   : > { %s861_s23 = scalar_select %p720_p6, 1, 0 }
   0xe   : > { %p725_p8 = pnand %p397_p5, %p135_p7  ;;  %s644_s25 = smov [#allocation5]  }
   0xf   : > { %s147_s26 = sshll.u32 %s644_s25, 4  ;;  %s32_s28 = sadd.s32 1, %s638_s16  ;;  %s148_s26 = int_to_ptr.vmem [resolvable:$true] %s147_s26 }
  0x10   : > { %p433_p9 = pneg %p725_p8  ;;  %s515_s29 = scalar_lea.vmem %s148_s26, 256 }
  0x11   : > { %p516_p13 = scmp.ne.s32.totalorder %s148_s26, %s515_s29  ;;  %p523_p5 = scmp.lt.s32.totalorder %s148_s26, %s148_s26 }
  0x12   : > { %p734_p11 = pnand %p433_p9, %p705_p1  ;;  %p524_p7 = scmp.lt.s32.totalorder %s515_s29, %s515_s29 }
  0x14   : > { %p506_p12 = pneg %p734_p11  ;;  %p525_p6 = por %p524_p7, %p523_p5 }
  0x16   : > { %p518_p0 = pnand %p516_p13, %p506_p12 }
  0x18   : > { %p519_p3 = pneg %p518_p0 }
  0x1a   : > { %p526_p4 = pnand %p525_p6, %p519_p3 }
  0x1c   : > { %529 = shalt.err (!%p526_p4)
}
  0x1d   : > { %s645_s30 = smov 64   ;;  %s646_s4 = smov 4  }
  0x1e   : > { %436 = dma.hbm_to_vmem [thread:$0]  (!%p734_p11), %s854_s1, 256, %s148_s26, [#allocation6], %s645_s30, %s645_s30, %s646_s4  }
  0x1f   : > { %p34_p6 = scmp.ge.s32.totalorder %s32_s28, 2  ;;  %s41_s7 = sadd.s32 1, %s630_s14 }
  0x20   : > { %p48_p4 = scmp.ne.s32.totalorder %s630_s14, %s626_s13  ;;  %p49_p9 = scmp.eq.s32.totalorder %s642_s17, 0 }
  0x21   : > { %s876_s28 = smov (%p34_p6, %s32_s28), 0  ;;  %p446_p0 = scmp.lt.s32.totalorder %s642_s17, 2 }
  0x22   : > { %p752_p12 = por %p49_p9, %p48_p4  ;;  %p758_p13 = por %p709_p2, %p48_p4 }
  0x23   : > { %s36_s10 = ssub.s32 %s638_s16, %s876_s28  ;;  %s164_s11 = sand.u32 1, %s630_s14  }
  0x24   : > { %p39_p11 = scmp.eq.s32.totalorder %s36_s10, 0  ;;  %s400_s18 = sshll.u32 %s164_s11, 2 }
  0x25   : > { %s401_s25 = sshll.u32 %s638_s16, 6  ;;  %s168_s30 = scalar_lea.vmem [#allocation2], %s400_s18 }
  0x26   : > { %s767_s19 = scalar_select %p39_p11, %s630_s14, %s41_s7  }
  0x27   : > { %s174_s29 = scalar_lea.hbm %s853_s0, %s401_s25  ;;  %s176_s4 = sshll.u32 %s168_s30, 4  ;;  %s177_s4 = int_to_ptr.vmem [resolvable:$true] %s176_s4 }
  0x28   : > { %p775_p2 = pnand %p446_p0, %p752_p12  ;;  %s165_s5 = scalar_lea.sflag [#allocation3], %s164_s11 }
  0x29   : > { %s543_s6 = scalar_lea.vmem %s177_s4, 64  ;;  %s647_s7 = smov [#allocation2]  }
  0x2a   : > { %p532_p3 = pneg %p775_p2  ;;  %p544_p5 = scmp.ne.s32.totalorder %s177_s4, %s543_s6 }
  0x2b   : > { %s548_s10 = sshll.u32 %s647_s7, 4  ;;  %s549_s10 = int_to_ptr.vmem [resolvable:$false] %s548_s10 }
  0x2c   : > { %p546_p7 = pnand %p544_p5, %p532_p3  ;;  %s550_s25 = scalar_lea.vmem %s549_s10, 128 }
  0x2d   : > { %p551_p4 = scmp.lt.s32.totalorder %s177_s4, %s549_s10  ;;  %p552_p9 = scmp.lt.s32.totalorder %s550_s25, %s543_s6 }
  0x2e   : > { %p547_p6 = pneg %p546_p7 }
  0x2f   : > { %p553_p11 = por %p552_p9, %p551_p4 }
  0x31   : > { %p554_p10 = pnand %p553_p11, %p547_p6 }
  0x33   : > { %557 = shalt.err (!%p554_p10)
}
  0x34   : > { %440 = dma.hbm_to_vmem [thread:$0]  (!%p775_p2), %s174_s29, 64, %s177_s4, %s165_s5  }
  0x35   : > { %185 = sbr.rel (%p725_p8) target bundleno = 281 (0x119), region = 32  ;;  %s786_s8 = sand.u32 (!%p725_p8), 1, %s626_s13  }
  0x36   : > { %s403_s11 = sshll.u32 (!%p725_p8), %s786_s8, 2  ;;  %s188_s18 = scalar_lea.sflag (!%p725_p8), [#allocation3], %s786_s8 }
  0x37   : > { %s191_s26 = scalar_lea.vmem (!%p725_p8), [#allocation2], %s403_s11  ;;  %p867_p12 = scmp.ne.s32.totalorder (!%p725_p8), %s860_s22, 0 }
  0x3a   : > { %609 = dma.done.wait (%p867_p12), %s188_s18, 64  }
  0x3b   : > { %611 = vsyncadd (%p867_p12), %s188_s18, 4294967232 }
  0x3c   : > { %613 = dma.done.wait (%p705_p1), [#allocation6], 256  }
  0x3d   : > { %615 = vsyncadd (%p705_p1), [#allocation6], 4294967040  ;;  %v648_v0 = vmov 0.0   ;;  %vm649_vm0 = vmmov 0   ;;  %v502_v1 = vld [vmem:[#allocation5 + $0x8] sm:$0xff]   ;;  %v503_v2 = vld [vmem:[#allocation5] sm:$0xff]  }
  0x3e   : > { %417 = vmatprep.subr.bf16.mxu0 %v648_v0  ;;  %421 = vmatprep.mubr.msk.bf16.mxu0 %vm649_vm0, %v648_v0  ;;  %v219_v3 = vld [vmem:[%s191_s26] sm:$0xf]  ;;  %vm243_vm1 = vcmask 261120   ;;  %s411_s20 = sshll.u32 %s634_s15, 6  ;;  %s217_s27 = scalar_lea.vmem [#allocation7], %s403_s11  ;;  %vm288_vm2 = vcmask 781312  }
  0x3f   : > { %418 = vmatpush3.bf16.msra.mxu0 %v502_v1  ;;  %v406_v4 = vld [vmem:[%s855_s2] ss:$0 sm:$0xff]  ;;  %s305_s29 = sshll.u32 %s217_s27, 4  ;;  %s805_s21 = scalar_lea.hbm %s856_s3, %s411_s20  ;;  %s807_s29 = int_to_ptr.vmem [resolvable:$true] %s305_s29 }
  0x40   : > { %419 = vmatprep.subr.bf16.mxu0 %v648_v0  ;;  %s291_s15 = scalar_lea.sflag [#allocation4], %s786_s8  ;;  %s558_s5 = scalar_lea.vmem %s807_s29, 64 }
  0x41   : > { %p559_p1 = scmp.ne.s32.totalorder %s807_s29, %s558_s5  ;;  %s650_s6 = smov [#allocation7]  }
  0x42   : > { %s562_s7 = sshll.u32 %s650_s6, 4  ;;  %s563_s7 = int_to_ptr.vmem [resolvable:$false] %s562_s7 }
  0x43   : > { %420 = vmatpush3.bf16.msra.mxu0 %v503_v2  ;;  %p560_p8 = pnand %p559_p1, %p758_p13  ;;  %s564_s10 = scalar_lea.vmem %s563_s7, 128 }
  0x44   : > { %p565_p0 = scmp.lt.s32.totalorder %s807_s29, %s563_s7  ;;  %p566_p2 = scmp.lt.s32.totalorder %s564_s10, %s558_s5 }
  0x45   : > { %p561_p10 = pneg %p560_p8 }
  0x46   : > { %422 = vmatmul.mubr.msk.bf16.vlgmr.msra.gmra.mxu0 %vm243_vm1, %v219_v3  ;;  %p567_p3 = por %p566_p2, %p565_p0 }
  0x48   : > { %p568_p5 = pnand %p567_p3, %p561_p10 }
 0x106   : > { %v281_v5 = vpop.f32.mrf.mxu0 }
 0x107   : > { %v282_v6 = vadd.f32 %v406_v4, %v281_v5 }
 0x108   : > { %v423_v7 = vpop.f32.mrf.mxu0 }
 0x109   : > { %v287_v8 = vpack.c.bf16 %v282_v6, %v282_v6 }
 0x10a   : > { %v284_v9 = vpop.f32.mrf.mxu0 }
 0x10b   : > { %289 = vst.msk [vmem:[%s217_s27] sm:$0xf] %vm288_vm2, %v287_v8 }
 0x10c   : > { %v424_v10 = vpop.f32.mrf.mxu0 }
 0x10d   : > { %571 = shalt.err (!%p568_p5)
}
 0x10e   : > { %s572_s25 = scalar_lea.hbm %s805_s21, 64  ;;  %s576_s18 = scalar_lea.hbm %s856_s3, 128 }
 0x10f   : > { %p573_p7 = scmp.ne.s32.totalorder %s805_s21, %s572_s25  ;;  %p577_p9 = scmp.lt.s32.totalorder %s805_s21, %s856_s3 }
 0x110   : > { %p578_p11 = scmp.lt.s32.totalorder %s576_s18, %s572_s25 }
 0x111   : > { %p574_p6 = pnand %p573_p7, %p758_p13 }
 0x112   : > { %p579_p12 = por %p578_p11, %p577_p9 }
 0x113   : > { %p575_p4 = pneg %p574_p6 }
 0x115   : > { %p580_p1 = pnand %p579_p12, %p575_p4 }
 0x117   : > { %583 = shalt.err (!%p580_p1)
}
 0x118   : > { %431 = dma.vmem_to_hbm [thread:$0]  (%p758_p13), %s807_s29, 64, %s805_s21, %s291_s15  }
 0x119 PF: > { %s317_s24 = sand.u32 1, %s622_s12   ;;  %p868_p8 = scmp.ne.s32.totalorder %s861_s23, 0 }
 0x11a   : > { %p869_p10 = scmp.ge.s32.totalorder %s642_s17, 2  ;;  %s318_s20 = scalar_lea.sflag [#allocation4], %s317_s24 }
 0x11c   : > { %p442_p0 = pnand %p869_p10, %p868_p8 }
 0x11e   : > { %p443_p2 = pneg %p442_p0 }
 0x120   : > { %617 = dma.done.wait (%p443_p2), %s318_s20, 64  }
 0x121   : > { %619 = vsyncadd (%p443_p2), %s318_s20, 4294967232  ;;  %s20_s17 = sadd.s32 1, %s642_s17   ;;  %s870_s12 = smov %s626_s13 }
 0x122   : > { %p17_p3 = scmp.ge.s32.totalorder %s20_s17, 4   ;;  %s871_s13 = smov %s630_s14 }
 0x123   : > { %s872_s14 = smov %s767_s19  ;;  %s873_s15 = smov %s638_s16 }
 0x124   : > { %s874_s16 = smov %s876_s28  ;;  %19 = sbr.rel (!%p17_p3) target bundleno = 7 (0x7), region = 81 }
 0x129   :  { %323 = vsyncpa [#allocation3], 1 }
 0x12a   :  { %325 = vsyncpa [#allocation3 + $0x1], 1 }
 0x12b   :  { %326 = vsyncpa [#allocation6], 1 }
 0x12c   :  { %327 = vsyncpa [#allocation4], 1 }
 0x12d   :  { %329 = vsyncpa [#allocation4 + $0x1], 1 }

</bundles_post_ra>
